<compile_context>
chip_gen: v5e
topology: v5e:2x2
jax: 0.10.0
libtpu: 0.0.40
codegen_flags: <defaults>
</compile_context>

<pallas_src>
import jax
import jax.numpy as jnp
from jax.experimental import pallas as pl
from jax.experimental.pallas import tpu as pltpu


def _round_up(v, m):
    return ((v + m - 1) // m) * m


# ---------------------------------------------------------------------------
# Kernel body: one fused GEMM per batch block. Weight + bias blocks are
# grid-invariant (constant index_map), so the pipeline keeps them resident.
# ---------------------------------------------------------------------------
def tabl_kernel(x_ref, wbigt_ref, bias_ref, y_ref):
    y = jnp.dot(x_ref[...], wbigt_ref[...], preferred_element_type=jnp.float32)
    y_ref[...] = (y + bias_ref[...]).astype(y_ref.dtype)


# ---------------------------------------------------------------------------
# One-time parameter prep (hoisted out of the per-call path).
#   kron(W1, W2)[o*out2 + p, i*in2 + j] = W1[o, i] * W2[p, j]
# pre-transposed so the kernel never takes .T in-body; N zero-padded to a
# multiple of 128 so output stores are unmasked for any layer shape.
# ---------------------------------------------------------------------------
def tabl_prepare_params(W1, W2, bias):
    out1, _in1 = W1.shape
    out2, _in2 = W2.shape
    N = out1 * out2
    N_pad = _round_up(N, 128)
    WbigT = jnp.kron(W1, W2).T.astype(jnp.float32)          # (K, N)
    bias_flat = bias.reshape(1, N).astype(jnp.float32)       # (1, N)
    if N_pad != N:
        WbigT = jnp.pad(WbigT, ((0, 0), (0, N_pad - N)))
        bias_flat = jnp.pad(bias_flat, ((0, 0), (0, N_pad - N)))
    return WbigT, bias_flat


def _choose_block_rows(B, max_block_rows):
    # Large batches: at least 2 (parallel) grid steps so v7x's two TensorCores
    # both get work; small batches: a single (possibly partial) block.
    half = _round_up(pl.cdiv(B, 2), 8)
    return max(8, min(half, max_block_rows))


def tabl_forward_prepared(x, WbigT, bias_flat, out1, out2, *, max_block_rows=4096):
    B, in1, in2 = x.shape
    K = in1 * in2
    N = out1 * out2
    K_w, N_pad = WbigT.shape
    assert K_w == K, "prepared weight does not match input shape"

    x_flat = x.reshape(B, K)

    b_blk = _choose_block_rows(B, max_block_rows)
    grid = (pl.cdiv(B, b_blk),)          # partial last block handled by Pallas

    y_flat = pl.pallas_call(
        tabl_kernel,
        out_shape=jax.ShapeDtypeStruct((B, N_pad), x.dtype),
        grid_spec=pltpu.PrefetchScalarGridSpec(
            num_scalar_prefetch=0,
            grid=grid,
            in_specs=[
                pl.BlockSpec((b_blk, K), lambda b: (b, 0)),    # x block (lane-dense)
                pl.BlockSpec((K, N_pad), lambda b: (0, 0)),    # kron(W1,W2).T (resident)
                pl.BlockSpec((1, N_pad), lambda b: (0, 0)),    # flattened bias
            ],
            out_specs=pl.BlockSpec((b_blk, N_pad), lambda b: (b, 0)),
        ),
        compiler_params=pltpu.CompilerParams(
            dimension_semantics=("parallel",),
        ),
        cost_estimate=pl.CostEstimate(
            flops=2 * B * K * N_pad,
            transcendentals=0,
            bytes_accessed=4 * (B * K + K * N_pad + N_pad + B * N_pad),
        ),
    )(x_flat, WbigT, bias_flat)

    if N_pad != N:
        y_flat = y_flat[:, :N]
    return y_flat.reshape(B, out1, out2)


def tabl_forward(x, W1, W, W2, alpha, bias, *, max_block_rows=4096):
    """Convenience wrapper matching TABLLayer.forward's full parameter set.
    W and alpha only feed the dead attention branch of the reference forward
    (x_tilde is never consumed), so they do not affect the output."""
    del W, alpha  # dead in the reference forward
    out1, out2 = bias.shape
    WbigT, bias_flat = tabl_prepare_params(W1, W2, bias)
    return tabl_forward_prepared(x, WbigT, bias_flat, out1, out2,
                                 max_block_rows=max_block_rows)


# ---------------------------------------------------------------------------
# Pure-JAX reference mirroring the PyTorch forward line-by-line
# (including the dead attention branch, which never feeds y).
# ---------------------------------------------------------------------------
def tabl_reference(x, W1, W, W2, alpha, bias):
    in2 = x.shape[-1]
    x_bar = jnp.einsum("oi,bij->boj", W1, x)
    eye = jnp.eye(in2, dtype=W.dtype)
    Wmod = W - W * eye + (1.0 / in2) * eye
    E = jnp.einsum("boj,kj->bok", x_bar, Wmod)
    A = jax.nn.softmax(E, axis=-1)
    _x_tilde = alpha * (x_bar * A) + (1.0 - alpha) * x_bar  # unused, as in reference
    y = jnp.einsum("boj,pj->bop", x_bar, W2) + bias
    return y


def xavier_uniform(key, shape):
    fan_out, fan_in = shape
    bound = (6.0 / (fan_in + fan_out)) ** 0.5
    return jax.random.uniform(key, shape, jnp.float32, -bound, bound)


if __name__ == "__main__":
    # Shapes consistent with the module: input_shape=(in1, in2), output_shape=(out1, out2)
    B, in1, in2 = 2, 16, 8
    out1, out2 = 32, 4

    key = jax.random.PRNGKey(0)
    kx, k1, k2 = jax.random.split(key, 3)

    x = jax.random.normal(kx, (B, in1, in2), jnp.float32)

    # Deterministic parameter init mirroring TABLLayer.__init__
    W1 = xavier_uniform(k1, (out1, in1))
    W = jnp.full((in2, in2), 1.0 / in2, jnp.float32)
    W2 = xavier_uniform(k2, (out2, in2))
    alpha = jnp.float32(0.5)
    bias = jnp.zeros((out1, out2), jnp.float32)

    # One-time parameter prep (kron weight + flattened bias), then forward.
    WbigT, bias_flat = tabl_prepare_params(W1, W2, bias)
    y = tabl_forward_prepared(x, WbigT, bias_flat, out1, out2)
    jax.block_until_ready(y)

    y_ref = tabl_reference(x, W1, W, W2, alpha, bias)
    assert y.shape == (B, out1, out2)
    # kron-fused GEMM changes f32 summation order slightly -> allow ~1e-5 noise
    assert jnp.allclose(y, y_ref, atol=1e-4, rtol=1e-4), "mismatch vs reference"

    print("KERNEL_OK")
</pallas_src>

<mosaic_0001>
module attributes {stable_mosaic.version = 11 : i64} {
  func.func @tabl_kernel(%arg0: i32, %arg1: memref<8x128xf32, #tpu.memory_space<vmem>>, %arg2: memref<128x128xf32, #tpu.memory_space<vmem>>, %arg3: memref<1x128xf32, #tpu.memory_space<vmem>>, %arg4: memref<8x128xf32, #tpu.memory_space<vmem>>) attributes {dimension_semantics = [#tpu.dimension_semantics<parallel>], iteration_bounds = array<i64: 1>, scalar_prefetch = 0 : i64, scratch_operands = 0 : i64, tpu.core_type = #tpu.core_type<tc>, window_params = [{transform_indices = @transform_0, window_bounds = array<i64: 8, 128>}, {pipeline_mode = #tpu.pipeline_mode<synchronous>, transform_indices = @transform_1, window_bounds = array<i64: 128, 128>}, {pipeline_mode = #tpu.pipeline_mode<synchronous>, transform_indices = @transform_2, window_bounds = array<i64: 1, 128>}, {transform_indices = @transform_3, window_bounds = array<i64: 8, 128>}]} {
    %c0 = arith.constant 0 : index
    %c0_0 = arith.constant 0 : index
    %0 = vector.load %arg1[%c0, %c0_0] : memref<8x128xf32, #tpu.memory_space<vmem>>, vector<8x128xf32>
    %c0_1 = arith.constant 0 : index
    %c0_2 = arith.constant 0 : index
    %1 = vector.load %arg2[%c0_1, %c0_2] : memref<128x128xf32, #tpu.memory_space<vmem>>, vector<128x128xf32>
    %cst = arith.constant dense<0.000000e+00> : vector<8x128xf32>
    %2 = tpu.matmul %0, %1, %cst {dimension_numbers = #tpu.dot_dimension_numbers<[1], [0], [0], [1], [0, 0, 1, 1], [], []>} : vector<8x128xf32>, vector<128x128xf32>, vector<8x128xf32> -> vector<8x128xf32>
    %c0_3 = arith.constant 0 : index
    %c0_4 = arith.constant 0 : index
    %3 = vector.load %arg3[%c0_3, %c0_4] : memref<1x128xf32, #tpu.memory_space<vmem>>, vector<1x128xf32>
    %4 = vector.broadcast %3 : vector<1x128xf32> to vector<8x128xf32>
    %5 = arith.addf %2, %4 : vector<8x128xf32>
    %c0_5 = arith.constant 0 : index
    %c0_6 = arith.constant 0 : index
    %6 = vector.load %arg4[%c0_5, %c0_6] : memref<8x128xf32, #tpu.memory_space<vmem>>, vector<8x128xf32>
    tpu.vector_store %arg4[%c0_5, %c0_6], %5 {strides = array<i32>} : memref<8x128xf32, #tpu.memory_space<vmem>>, vector<8x128xf32>,
    return
  }
  func.func @transform_0(%arg0: i32) -> (i32, i32) {
    %c0_i32 = arith.constant 0 : i32
    %c0_i32_0 = arith.constant 0 : i32
    return %arg0, %c0_i32 : i32, i32
  }
  func.func @transform_1(%arg0: i32) -> (i32, i32) {
    %c0_i32 = arith.constant 0 : i32
    %c0_i32_0 = arith.constant 0 : i32
    %c0_i32_1 = arith.constant 0 : i32
    return %c0_i32, %c0_i32_0 : i32, i32
  }
  func.func @transform_2(%arg0: i32) -> (i32, i32) {
    %c0_i32 = arith.constant 0 : i32
    %c0_i32_0 = arith.constant 0 : i32
    %c0_i32_1 = arith.constant 0 : i32
    return %c0_i32, %c0_i32_0 : i32, i32
  }
  func.func @transform_3(%arg0: i32) -> (i32, i32) {
    %c0_i32 = arith.constant 0 : i32
    %c0_i32_0 = arith.constant 0 : i32
    return %arg0, %c0_i32 : i32, i32
  }
}

</mosaic_0001>

<bundles_post_ra>
// kernel: tpu_custom_call.1
= control target key start
LH: loop header
LB: loop body
LE: loop exit
PB: predicated region body
PF: predicated region fallthrough
CT: control target
= control target key end

     0   :  { %8 = vsyncpa [#allocation3], 0  ;;  %s240_s0 = inlined_call_operand.hbm [shape: f32[2,128], index: 0, kind: input, shape index: {}]   ;;  %s241_s1 = inlined_call_operand.hbm [shape: f32[128,128], index: 1, kind: input, shape index: {}]   ;;  %s242_s2 = inlined_call_operand.vmem [shape: f32[1,128], index: 2, kind: input, shape index: {}]   ;;  %s243_s3 = inlined_call_operand.hbm [shape: f32[2,128], index: 3, kind: output, shape index: {}]  }
   0x1   :  { %9 = vsyncpa [#allocation6], 0 }
   0x2   :  { %10 = vsyncpa [#allocation4], 0 }
   0x3   :  { %14 = vsyncadd [#allocation3], 96  ;;  %s15_s14 = sshll.u32 %s240_s0, 4  ;;  %s195_s15 = smov [#allocation2]   ;;  %s16_s14 = int_to_ptr.hbm [resolvable:$true] %s15_s14 }
   0x4   :  { %s17_s16 = sshll.u32 %s195_s15, 4  ;;  %s28_s19 = sshll.u32 %s241_s1, 4  ;;  %s18_s16 = int_to_ptr.vmem [resolvable:$true] %s17_s16  ;;  %s29_s19 = int_to_ptr.hbm [resolvable:$true] %s28_s19 }
   0x5   :  { %s196_s20 = smov 32   ;;  %s197_s21 = smov 2  }
   0x6   :  { %23 = dma.hbm_to_vmem [thread:$0]  %s16_s14, 32, %s18_s16, [#allocation3], %s196_s20, %s196_s20, %s197_s21  }
   0x7   :  { %s198_s22 = smov [#allocation5]   ;;  %s199_s24 = smov 128  }
   0x8   :  { %s30_s23 = sshll.u32 %s198_s22, 4  ;;  %s200_s0 = smov 8   ;;  %s31_s23 = int_to_ptr.vmem [resolvable:$true] %s30_s23 }
   0x9   :  { %36 = dma.hbm_to_vmem [thread:$0]  %s29_s19, 2048, %s31_s23, [#allocation6], %s199_s24, %s199_s24, %s200_s0  }
   0xa   :  { %189 = dma.done.wait [#allocation3], 128  }
   0xb   :  { %190 = vsyncadd [#allocation3], 4294967168 }
   0xc   :  { %191 = dma.done.wait [#allocation6], 2048  }
   0xd   :  { %192 = vsyncadd [#allocation6], 4294965248  ;;  %v63_v0 = vld [vmem:[#allocation5 + $0x78] sm:$0xff]  ;;  %v62_v1 = vld [vmem:[#allocation5 + $0x70] sm:$0xff] }
   0xe   :  { %68 = vmatpush.msra.mxu0 %v63_v0  ;;  %v61_v2 = vld [vmem:[#allocation5 + $0x68] sm:$0xff]  ;;  %v60_v3 = vld [vmem:[#allocation5 + $0x60] sm:$0xff]  ;;  %v59_v4 = vld [vmem:[#allocation5 + $0x58] sm:$0xff] }
   0xf   :  { %v58_v5 = vld [vmem:[#allocation5 + $0x50] sm:$0xff]  ;;  %v57_v6 = vld [vmem:[#allocation5 + $0x48] sm:$0xff]  ;;  %v56_v7 = vld [vmem:[#allocation5 + $0x40] sm:$0xff] }
  0x10   :  { %69 = vmatpush.msra.mxu0 %v62_v1  ;;  %v55_v8 = vld [vmem:[#allocation5 + $0x38] sm:$0xff]  ;;  %v54_v9 = vld [vmem:[#allocation5 + $0x30] sm:$0xff]  ;;  %v53_v10 = vld [vmem:[#allocation5 + $0x28] sm:$0xff] }
  0x11   :  { %v52_v11 = vld [vmem:[#allocation5 + $0x20] sm:$0xff]  ;;  %v51_v12 = vld [vmem:[#allocation5 + $0x18] sm:$0xff]  ;;  %v50_v13 = vld [vmem:[#allocation5 + $0x10] sm:$0xff] }
  0x12   :  { %70 = vmatpush.msra.mxu0 %v61_v2  ;;  %v49_v14 = vld [vmem:[#allocation5 + $0x8] sm:$0xff]  ;;  %v48_v15 = vld [vmem:[#allocation5] sm:$0xff]  ;;  %v47_v16 = vld [vmem:[#allocation2] sm:$0xff] }
  0x13   :  { %v116_v17 = vld [vmem:[%s242_s2] ss:$0 sm:$0xff] }
  0x14   :  { %71 = vmatpush.msra.mxu0 %v60_v3 }
  0x16   :  { %72 = vmatpush.msra.mxu0 %v59_v4 }
  0x18   :  { %73 = vmatpush.msra.mxu0 %v58_v5 }
  0x1a   :  { %74 = vmatpush.msra.mxu0 %v57_v6 }
  0x1c   :  { %75 = vmatpush.msra.mxu0 %v56_v7 }
  0x1e   :  { %76 = vmatpush.msra.mxu0 %v55_v8 }
  0x20   :  { %77 = vmatpush.msra.mxu0 %v54_v9 }
  0x22   :  { %78 = vmatpush.msra.mxu0 %v53_v10 }
  0x24   :  { %79 = vmatpush.msra.mxu0 %v52_v11 }
  0x26   :  { %80 = vmatpush.msra.mxu0 %v51_v12 }
  0x28   :  { %81 = vmatpush.msra.mxu0 %v50_v13 }
  0x2a   :  { %82 = vmatpush.msra.mxu0 %v49_v14 }
  0x2c   :  { %83 = vmatpush.msra.mxu0 %v48_v15 }
  0x2d   :  { %84 = vmatmul.f32.vlgmr.msra.gmra.mxu0 %v47_v16 }
  0xaa   :  { %v85_v18 = vpop.f32.mrf.mxu0 }
  0xab   :  { %v86_v19 = vadd.f32 %v116_v17, %v85_v18 }
  0xad   :  { %88 = vst [vmem:[#allocation7] sm:$0xff] %v86_v19 }
  0xae   :  { %92 = vsyncadd [#allocation4], 96  ;;  %s95_s28 = sshll.u32 %s243_s3, 4  ;;  %s201_s29 = smov [#allocation7]   ;;  %s96_s28 = int_to_ptr.hbm [resolvable:$true] %s95_s28 }
  0xaf   :  { %s93_s30 = sshll.u32 %s201_s29, 4  ;;  %s94_s30 = int_to_ptr.vmem [resolvable:$true] %s93_s30 }
  0xb0   :  { %101 = dma.vmem_to_hbm [thread:$0]  %s94_s30, 32, %s96_s28, [#allocation4], %s196_s20, %s196_s20, %s197_s21  }
  0xb1   :  { %193 = dma.done.wait [#allocation4], 128  }
  0xb2   :  { %194 = vsyncadd [#allocation4], 4294967168 }
  0xb3   :  { %106 = vsyncpa [#allocation3], 1 }
  0xb4   :  { %107 = vsyncpa [#allocation6], 1 }
  0xb5   :  { %108 = vsyncpa [#allocation4], 1 }

</bundles_post_ra>
